<compile_context>
chip_gen: v7x
topology: tpu7x:2x2x1
jax: 0.10.0
libtpu: 0.0.40
codegen_flags: <defaults>
</compile_context>

<pallas_src>
import jax
import jax.numpy as jnp
from jax.experimental import pallas as pl
from jax.experimental.pallas import tpu as pltpu


def graph_attention_layer(x, adj_i8, W, a_src, a_dst, bias, concat=True, tm=128):
    """Multi-head GAT layer. adj_i8 is an int8 [N, N] mask with self-loops."""
    N, Fin = x.shape
    H, _, d = W.shape
    HD = H * d

    # ---- fold per-head parameters into fused, lane-dense operands -------------
    # W_flat[:, h*d:(h+1)*d] == W[h]            -> one (Fin, H*d) projection matmul
    W_flat = jnp.transpose(W, (1, 0, 2)).reshape(Fin, HD).astype(jnp.bfloat16)
    # A_cat: column h = a_src[h] (rows h*d:(h+1)*d), column H+h = a_dst[h]
    A_cat = jnp.zeros((HD, 2 * H), jnp.float32)
    for h in range(H):
        A_cat = A_cat.at[h * d:(h + 1) * d, h].set(a_src[h, 0])
        A_cat = A_cat.at[h * d:(h + 1) * d, H + h].set(a_dst[h, 0])
    bias_flat = bias.reshape(1, HD).astype(jnp.float32)
    x_bf = x.astype(jnp.bfloat16)

    # ---- destination-row tiling (int8 adj => row tile must be a multiple of 32)
    TM = max(32, (int(tm) // 32) * 32)
    TM = min(TM, ((N + 31) // 32) * 32)
    N_pad = ((N + TM - 1) // TM) * TM
    if N_pad != N:
        x_bf = jnp.pad(x_bf, ((0, N_pad - N), (0, 0)))
        adj_i8 = jnp.pad(adj_i8, ((0, N_pad - N), (0, N_pad - N)))
    n_tiles = N_pad // TM

    # ======================= kernel 1: fused projection ========================
    # H_all = x @ W_flat  (bf16 in, f32 acc);  S = H_all @ A_cat  (src/dst scores)
    def _proj_kernel(x_ref, w_ref, acat_ref, h_ref, s_ref):
        hf = jnp.dot(x_ref[...], w_ref[...],
                     preferred_element_type=jnp.float32)          # (TM, H*d) f32
        s_ref[...] = jnp.dot(hf, acat_ref[...],
                             preferred_element_type=jnp.float32)  # (TM, 2H)
        h_ref[...] = hf.astype(jnp.bfloat16)

    h_all, s = pl.pallas_call(
        _proj_kernel,
        out_shape=(jax.ShapeDtypeStruct((N_pad, HD), jnp.bfloat16),
                   jax.ShapeDtypeStruct((N_pad, 2 * H), jnp.float32)),
        grid=(n_tiles,),
        in_specs=[
            pl.BlockSpec((TM, Fin), lambda i: (i, 0)),      # x tile (bf16)
            pl.BlockSpec((Fin, HD), lambda i: (0, 0)),      # W_flat (bf16)
            pl.BlockSpec((HD, 2 * H), lambda i: (0, 0)),    # A_cat
        ],
        out_specs=(pl.BlockSpec((TM, HD), lambda i: (i, 0)),
                   pl.BlockSpec((TM, 2 * H), lambda i: (i, 0))),
        compiler_params=pltpu.CompilerParams(
            dimension_semantics=("parallel",)),
    )(x_bf, W_flat, A_cat)

    s_srcT = jnp.transpose(s[:, :H])   # (H, N_pad): source scores, lane-major
    s_dst = s[:, H:]                   # (N_pad, H): destination scores

    # ================== kernel 2: masked softmax + aggregation =================
    # TODO(synk): for very large N (>= ~4-8k) tile the source axis too with an
    # online (flash-style) softmax so VMEM stays O(TM x TK); here the full source
    # axis is streamed per destination tile.
    def _attn_kernel(adj_ref, sdst_ref, ssrcT_ref, hall_ref, bias_ref, o_ref):
        mask = adj_ref[...] > 0                                   # (TM, N) bool
        s_d = sdst_ref[...]                                       # (TM, H) f32
        h_src = hall_ref[...]                                     # (N, H*d) bf16
        pieces = []
        for h in range(H):
            # e[i, j] = LeakyReLU(a_dst.h_i + a_src.h_j), slope 0.2 (PyG default)
            e = s_d[:, h:h + 1] + ssrcT_ref[h:h + 1, :]           # (TM, N)
            e = jnp.where(e > 0, e, 0.2 * e)
            scores = jnp.where(mask, e, jnp.float32(-1e30))
            m = jnp.max(scores, axis=-1, keepdims=True)
            p = jnp.exp(scores - m)          # masked entries underflow to 0
            denom = jnp.sum(p, axis=-1, keepdims=True)
            acc = jnp.dot(p.astype(jnp.bfloat16),                 # (TM, d) f32
                          h_src[:, h * d:(h + 1) * d],
                          preferred_element_type=jnp.float32)
            inv = pl.reciprocal(jnp.maximum(denom, jnp.float32(1e-30)),
                                approx=True)
            pieces.append(acc * inv)
        # TODO(synk): training-mode F.dropout on attention coefficients omitted.
        out = jnp.concatenate(pieces, axis=-1) + bias_ref[...]    # (TM, H*d)
        o_ref[...] = out.astype(o_ref.dtype)

    out = pl.pallas_call(
        _attn_kernel,
        out_shape=jax.ShapeDtypeStruct((N_pad, HD), jnp.float32),
        grid=(n_tiles,),
        in_specs=[
            pl.BlockSpec((TM, N_pad), lambda i: (i, 0)),    # adj tile (int8)
            pl.BlockSpec((TM, H), lambda i: (i, 0)),        # dst scores tile
            pl.BlockSpec((H, N_pad), lambda i: (0, 0)),     # src scores (all)
            pl.BlockSpec((N_pad, HD), lambda i: (0, 0)),    # H_all (all, bf16)
            pl.BlockSpec((1, HD), lambda i: (0, 0)),        # fused bias
        ],
        out_specs=pl.BlockSpec((TM, HD), lambda i: (i, 0)),
        compiler_params=pltpu.CompilerParams(
            dimension_semantics=("parallel",)),
    )(adj_i8, s_dst, s_srcT, h_all, bias_flat)

    out = out[:N]
    if concat:
        # head h already occupies columns [h*d : (h+1)*d]  == torch.cat(dim=1)
        return out
    return out.reshape(N, H, d).mean(axis=1)


def _reference(x, adj, W, a_src, a_dst, bias, concat=True):
    """Pure-JAX reference (f32 math; projection mimics the kernel's bf16 inputs)."""
    H = W.shape[0]
    mask = adj > 0
    xb = x.astype(jnp.bfloat16)
    outs = []
    for h in range(H):
        hf = jnp.dot(xb, W[h].astype(jnp.bfloat16),
                     preferred_element_type=jnp.float32)
        ss = hf @ a_src[h, 0]
        sd = hf @ a_dst[h, 0]
        e = sd[:, None] + ss[None, :]
        e = jnp.where(e > 0, e, 0.2 * e)
        scores = jnp.where(mask, e, -1e30)
        p = jnp.where(mask, jnp.exp(scores - scores.max(-1, keepdims=True)), 0.0)
        alpha = p / p.sum(-1, keepdims=True)
        outs.append(alpha @ hf + bias[h, 0])
    if concat:
        return jnp.concatenate(outs, axis=1)
    return jnp.mean(jnp.stack(outs, 0), axis=0)


def _build_adjacency(edge_index, num_nodes):
    # adj[dst, src] = 1 for every edge src->dst, plus self loops; stored as int8
    # (4x less HBM/VMEM traffic than f32 for the only O(N^2) operand).
    adj = jnp.zeros((num_nodes, num_nodes), jnp.int8)
    adj = adj.at[edge_index[1], edge_index[0]].set(1)
    adj = jnp.maximum(adj, jnp.eye(num_nodes, dtype=jnp.int8))
    return adj


if __name__ == "__main__":
    # Small synthetic problem: 48 nodes, in_dim=8, out_dim=16, 4 heads (d=4/head).
    N, IN_DIM, OUT_DIM, H, E = 48, 8, 16, 4, 160
    d = OUT_DIM // H  # out_dim_per_head (concat=True)

    key = jax.random.PRNGKey(0)
    kx, ke, kw, ks, kd, kb = jax.random.split(key, 6)

    x = jax.random.normal(kx, (N, IN_DIM), jnp.float32)
    edge_index = jax.random.randint(ke, (2, E), 0, N, dtype=jnp.int32)
    adj = _build_adjacency(edge_index, N)

    # Deterministic parameter init (shapes follow GATConv(in_dim, d, heads=1)).
    W = jax.random.normal(kw, (H, IN_DIM, d), jnp.float32) * 0.3
    a_src = jax.random.normal(ks, (H, 1, d), jnp.float32) * 0.3
    a_dst = jax.random.normal(kd, (H, 1, d), jnp.float32) * 0.3
    bias = jax.random.normal(kb, (H, 1, d), jnp.float32) * 0.1

    out = graph_attention_layer(x, adj, W, a_src, a_dst, bias, concat=True, tm=32)
    out = jax.block_until_ready(out)

    ref = _reference(x, adj, W, a_src, a_dst, bias, concat=True)
    assert out.shape == (N, OUT_DIM), out.shape
    max_err = float(jnp.max(jnp.abs(out - ref)))
    assert jnp.allclose(out, ref, atol=2e-2, rtol=2e-2), f"mismatch: {max_err}"

    print("KERNEL_OK")
</pallas_src>

<mosaic_0001>
module attributes {stable_mosaic.version = 11 : i64} {
  func.func @_proj_kernel(%arg0: i32, %arg1: memref<32x8xbf16, #tpu.memory_space<vmem>>, %arg2: memref<8x16xbf16, #tpu.memory_space<vmem>>, %arg3: memref<16x8xf32, #tpu.memory_space<vmem>>, %arg4: memref<32x16xbf16, #tpu.memory_space<vmem>>, %arg5: memref<32x8xf32, #tpu.memory_space<vmem>>) attributes {dimension_semantics = [#tpu.dimension_semantics<parallel>], iteration_bounds = array<i64: 2>, scalar_prefetch = 0 : i64, scratch_operands = 0 : i64, tpu.core_type = #tpu.core_type<tc>, window_params = [{transform_indices = @transform_0, window_bounds = array<i64: 32, 8>}, {pipeline_mode = #tpu.pipeline_mode<synchronous>, transform_indices = @transform_1, window_bounds = array<i64: 8, 16>}, {pipeline_mode = #tpu.pipeline_mode<synchronous>, transform_indices = @transform_2, window_bounds = array<i64: 16, 8>}, {transform_indices = @transform_3, window_bounds = array<i64: 32, 16>}, {transform_indices = @transform_4, window_bounds = array<i64: 32, 8>}]} {
    %c0 = arith.constant 0 : index
    %c0_0 = arith.constant 0 : index
    %0 = vector.load %arg1[%c0, %c0_0] : memref<32x8xbf16, #tpu.memory_space<vmem>>, vector<32x8xbf16>
    %c0_1 = arith.constant 0 : index
    %c0_2 = arith.constant 0 : index
    %1 = vector.load %arg2[%c0_1, %c0_2] : memref<8x16xbf16, #tpu.memory_space<vmem>>, vector<8x16xbf16>
    %cst = arith.constant dense<0.000000e+00> : vector<32x16xf32>
    %2 = tpu.matmul %0, %1, %cst {dimension_numbers = #tpu.dot_dimension_numbers<[1], [0], [0], [1], [0, 0, 1, 1], [], []>} : vector<32x8xbf16>, vector<8x16xbf16>, vector<32x16xf32> -> vector<32x16xf32>
    %c0_3 = arith.constant 0 : index
    %c0_4 = arith.constant 0 : index
    %3 = vector.load %arg3[%c0_3, %c0_4] : memref<16x8xf32, #tpu.memory_space<vmem>>, vector<16x8xf32>
    %cst_5 = arith.constant dense<0.000000e+00> : vector<32x8xf32>
    %4 = tpu.matmul %2, %3, %cst_5 {dimension_numbers = #tpu.dot_dimension_numbers<[1], [0], [0], [1], [0, 0, 1, 1], [], []>} : vector<32x16xf32>, vector<16x8xf32>, vector<32x8xf32> -> vector<32x8xf32>
    %c0_6 = arith.constant 0 : index
    %c0_7 = arith.constant 0 : index
    %5 = vector.load %arg5[%c0_6, %c0_7] : memref<32x8xf32, #tpu.memory_space<vmem>>, vector<32x8xf32>
    tpu.vector_store %arg5[%c0_6, %c0_7], %4 {strides = array<i32>} : memref<32x8xf32, #tpu.memory_space<vmem>>, vector<32x8xf32>,
    %6 = arith.truncf %2 : vector<32x16xf32> to vector<32x16xbf16>
    %c0_8 = arith.constant 0 : index
    %c0_9 = arith.constant 0 : index
    %7 = vector.load %arg4[%c0_8, %c0_9] : memref<32x16xbf16, #tpu.memory_space<vmem>>, vector<32x16xbf16>
    tpu.vector_store %arg4[%c0_8, %c0_9], %6 {strides = array<i32>} : memref<32x16xbf16, #tpu.memory_space<vmem>>, vector<32x16xbf16>,
    return
  }
  func.func @transform_0(%arg0: i32) -> (i32, i32) {
    %c0_i32 = arith.constant 0 : i32
    %c0_i32_0 = arith.constant 0 : i32
    return %arg0, %c0_i32 : i32, i32
  }
  func.func @transform_1(%arg0: i32) -> (i32, i32) {
    %c0_i32 = arith.constant 0 : i32
    %c0_i32_0 = arith.constant 0 : i32
    %c0_i32_1 = arith.constant 0 : i32
    return %c0_i32, %c0_i32_0 : i32, i32
  }
  func.func @transform_2(%arg0: i32) -> (i32, i32) {
    %c0_i32 = arith.constant 0 : i32
    %c0_i32_0 = arith.constant 0 : i32
    %c0_i32_1 = arith.constant 0 : i32
    return %c0_i32, %c0_i32_0 : i32, i32
  }
  func.func @transform_3(%arg0: i32) -> (i32, i32) {
    %c0_i32 = arith.constant 0 : i32
    %c0_i32_0 = arith.constant 0 : i32
    return %arg0, %c0_i32 : i32, i32
  }
  func.func @transform_4(%arg0: i32) -> (i32, i32) {
    %c0_i32 = arith.constant 0 : i32
    %c0_i32_0 = arith.constant 0 : i32
    return %arg0, %c0_i32 : i32, i32
  }
}

</mosaic_0001>

<bundles_post_ra>
// kernel: tpu_custom_call.1
= control target key start
LH: loop header
LB: loop body
LE: loop exit
PB: predicated region body
PF: predicated region fallthrough
CT: control target
= control target key end

     0   :  { %s608_s15 = smov 0   ;;  %s651_s0 = inlined_call_operand.vmem [shape: bf16[64,8], index: 0, kind: input, shape index: {}]   ;;  %s652_s1 = inlined_call_operand.vmem [shape: bf16[8,16], index: 1, kind: input, shape index: {}]   ;;  %s653_s2 = inlined_call_operand.vmem [shape: f32[16,8], index: 2, kind: input, shape index: {}]   ;;  %s654_s3 = inlined_call_operand.vmem [shape: bf16[64,16], index: 3, kind: output, shape index: {0}]   ;;  %s655_s4 = inlined_call_operand.vmem [shape: f32[64,8], index: 4, kind: output, shape index: {1}]  }
   0x1 LB: > { %s506_s16 = sadd.s32 4294967295, %s581_s15   ;;  %p510_p0 = scmp.ge.s32.totalorder %s581_s15, 1  ;;  %s581_s15 = sphi %s608_s15, %s15_s15  }
   0x2   : > { %p166_p1 = scmp.lt.s32.totalorder %s581_s15, 3 }
   0x4   : > { %p167_p2 = pnand %p510_p0, %p166_p1 }
   0x5   : > { %v220_v0 = vld [vmem:[%s652_s1] sm:$0xf] (!%p167_p2)  ;;  %vm238_vm0 = vcmask (!%p167_p2), 1043456   ;;  %s511_s19 = sshll.u32 (!%p167_p2), %s506_s16, 2  ;;  %vm231_vm1 = vcmask (!%p167_p2), 64512   ;;  %v292_v5 = vld [vmem:[%s653_s2 + $0x8] sm:$0xff] (!%p167_p2) }
   0x6   : > { %170 = sbr.rel (%p167_p2) target bundleno = 451 (0x1c3), region = 32  ;;  %564 = vmatprep.subr.msk.bf16.mxu0 (!%p167_p2), %vm238_vm0, %v220_v0  ;;  %v240_v1 = vsel (!%p167_p2), %vm238_vm0, %v220_v0, 0  ;;  %p198_p3 = scmp.lt.s32.totalorder (!%p167_p2), %s511_s19, 7  ;;  %v291_v4 = vld [vmem:[%s653_s2] sm:$0xff] (!%p167_p2)  ;;  %vm293_vm2 = vcmask (!%p167_p2), 130048   ;;  %vm411_vm3 = vcmask (!%p167_p2), 125952  }
   0x7   : > { %545 = vmatpush3.bf16.msra.mxu0 (!%p167_p2), %v240_v1  ;;  %v560_v6 = vpack.c.bf16 (!%p167_p2), %v292_v5, %v291_v4 }
   0x9   : > { %561 = vmatprep.subr.bf16.mxu1 (!%p167_p2), %v560_v6 }
   0xa   : > { %563 = vmatpush3.bf16.msra.mxu1 (!%p167_p2), %v560_v6 }
   0xd   : > { %s657_s19 = smov (!%p198_p3, %s511_s19), 7 }
   0xe   : > { %s512_s20 = sshll.u32 %s657_s19, 2  ;;  %s516_s5 = sshll.u32 %s657_s19, 3 }
   0xf   : > { %s201_s23 = scalar_lea.vmem %s651_s0, %s512_s20  ;;  %s207_s30 = scalar_lea.vmem %s654_s3, %s512_s20 }
  0x10   : > { %v573_v2 = vld [vmem:[%s201_s23] sm:$0xff]   ;;  %v574_v3 = vld [vmem:[%s201_s23 + $0x8] sm:$0xff]   ;;  %s213_s8 = scalar_lea.vmem %s655_s4, %s516_s5 }
  0x11   : > { %546 = vmatprep.mubr.msk.bf16.mxu0 %vm231_vm1, %v573_v2 }
  0x12   : > { %547 = vmatmul.mubr.msk.bf16.vlgmr.msra.gmra.mrb[0].mxu0 %vm231_vm1, %v574_v3 }
  0xe5   : > { %v548_v7 = vpop.f32.mrb[0].mxu0 }
  0xe6   : > { %v276_v8 = vpop.f32.mrb[1].mxu0  ;;  %v533_v13 = vpack.c.bf16 %v548_v7, %v548_v7 }
  0xe7   : > { %v531_v9 = vpack.c.bf16 %v276_v8, %v276_v8  ;;  %v549_v10 = vpop.f32.mrb[2].mxu0  ;;  %554 = vmatprep.mubr.msk.f32.mxu1 %vm293_vm2, %v276_v8 }
  0xe8   : > { %v279_v11 = vpop.f32.mrb[3].mxu0  ;;  %v534_v14 = vpack.c.bf16 %v549_v10, %v549_v10  ;;  %414 = vst.msk [vmem:[%s207_s30 + $0x8] sm:$0xf] %vm411_vm3, %v533_v13 }
  0xe9   : > { %412 = vst.msk [vmem:[%s207_s30] sm:$0xf] %vm411_vm3, %v531_v9  ;;  %v532_v12 = vpack.c.bf16 %v279_v11, %v279_v11  ;;  %555 = vmatmul.mubr.msk.f32.vlgmr.msra.gmra.mrb[0].mxu1 %vm293_vm2, %v279_v11 }
  0xea   : > { %557 = vmatprep.mubr.msk.f32.mxu1 %vm293_vm2, %v548_v7  ;;  %415 = vst.msk [vmem:[%s207_s30 + $0xc] sm:$0xf] %vm411_vm3, %v534_v14 }
  0xeb   : > { %413 = vst.msk [vmem:[%s207_s30 + $0x4] sm:$0xf] %vm411_vm3, %v532_v12 }
  0xed   : > { %558 = vmatmul.mubr.msk.f32.gmra.mrb[2].mxu1 %vm293_vm2, %v549_v10 }
 0x1bc   : > { %v556_v15 = vpop.f32.mrb[0].mxu1 }
 0x1bd   : > { %v372_v16 = vpop.f32.mrb[1].mxu1  ;;  %392 = vst.msk [vmem:[%s213_s8 + $0x8] sm:$0xff] %vm231_vm1, %v556_v15 }
 0x1be   : > { %391 = vst.msk [vmem:[%s213_s8] sm:$0xff] %vm231_vm1, %v372_v16 }
 0x1c0   : > { %v559_v17 = vpop.f32.mrb[2].mxu1 }
 0x1c1   : > { %v382_v18 = vpop.f32.mrb[3].mxu1  ;;  %394 = vst.msk [vmem:[%s213_s8 + $0x18] sm:$0xff] %vm231_vm1, %v559_v17 }
 0x1c2   : > { %393 = vst.msk [vmem:[%s213_s8 + $0x10] sm:$0xff] %vm231_vm1, %v382_v18 }
 0x1c3 PF: > { %s15_s15 = sadd.s32 1, %s581_s15  }
 0x1c4   : > { %p12_p4 = scmp.ge.s32.totalorder %s15_s15, 4  }
 0x1c6   :  { %14 = sbr.rel (!%p12_p4) target bundleno = 1 (0x1), region = 74 }

</bundles_post_ra>
